<compile_context>
chip_gen: v5e
topology: v5e:2x2
jax: 0.10.0
libtpu: 0.0.40
codegen_flags: <defaults>
</compile_context>

<pallas_src>
import jax
import jax.numpy as jnp
from jax.experimental import pallas as pl
from jax.experimental.pallas import tpu as pltpu


def _round_up(x, m):
    return (x + m - 1) // m * m


def conv_bn_kernel(p_ref, w_ref, scale_ref, shift_ref, o_ref):
    # p_ref: (TM, KCp)  w_ref: (KCp, Cp)  scale/shift: (1, Cp)  o_ref: (TM, Cp)
    acc = jnp.dot(p_ref[...], w_ref[...], preferred_element_type=jnp.float32)
    o_ref[...] = (acc * scale_ref[...] + shift_ref[...]).astype(o_ref.dtype)


def im2col_3x3x3(x):
    # x: (N, Cin, D, H, W)  ->  patches: (N, Do*Ho*Wo, Cin*27)
    N, Cin, D, H, W = x.shape
    Do, Ho, Wo = D - 2, H - 2, W - 2
    slices = []
    for kd in range(3):
        for kh in range(3):
            for kw in range(3):
                slices.append(x[:, :, kd:kd + Do, kh:kh + Ho, kw:kw + Wo])
    pat = jnp.stack(slices, axis=-1)              # (N, Cin, Do, Ho, Wo, 27)
    pat = jnp.transpose(pat, (0, 2, 3, 4, 1, 5))  # (N, Do, Ho, Wo, Cin, 27)
    return pat.reshape(N, Do * Ho * Wo, Cin * 27), (Do, Ho, Wo)


def net_forward(x, conv_w, conv_b, bn_gamma, bn_beta, bn_mean, bn_var,
                eps=1e-5, num_m_tiles=2):
    """x: (N, Cin, D, H, W) NCDHW.  Returns (N, Cout, D-2, H-2, W-2) NCDHW."""
    N, Cin, D, H, W = x.shape
    Cout = conv_w.shape[0]

    # --- im2col (wrapper-side glue; see TODO above for realistic sizes) ------
    patches, (Do, Ho, Wo) = im2col_3x3x3(x)            # (N, P, KC)
    P, KC = patches.shape[1], patches.shape[2]
    M = N * P
    patches = patches.reshape(M, KC)                   # fold batch into M

    # --- padding to lane/sublane-aligned, lane-dense shapes ------------------
    KCp = _round_up(KC, 128)                           # aligned contraction dim
    Cp = _round_up(Cout, 128)                          # lane-dense output dim
    TM = _round_up(pl.cdiv(M, num_m_tiles), 8)         # M tile (parallel axis)
    Mp = TM * num_m_tiles

    patches = jnp.pad(patches, ((0, Mp - M), (0, KCp - KC)))

    # weight (Cout, Cin, 3, 3, 3) -> (KC, Cout): channel-major flatten matches im2col
    w_mat = conv_w.reshape(Cout, KC).T
    w_mat = jnp.pad(w_mat, ((0, KCp - KC), (0, Cp - Cout)))

    # Fold conv bias + BN (inference) into a single scale/shift:
    #   y = ((mm + b) - mean) * gamma/std + beta = mm * scale + shift
    std = jnp.sqrt(bn_var + eps)
    scale = (bn_gamma / std).reshape(1, Cout)
    shift = ((conv_b - bn_mean) * (bn_gamma / std) + bn_beta).reshape(1, Cout)
    scale = jnp.pad(scale, ((0, 0), (0, Cp - Cout)))
    shift = jnp.pad(shift, ((0, 0), (0, Cp - Cout)))

    out = pl.pallas_call(
        conv_bn_kernel,
        out_shape=jax.ShapeDtypeStruct((Mp, Cp), x.dtype),
        grid_spec=pltpu.PrefetchScalarGridSpec(
            num_scalar_prefetch=0,
            grid=(num_m_tiles,),
            in_specs=[
                pl.BlockSpec((TM, KCp), lambda m: (m, 0)),
                pl.BlockSpec((KCp, Cp), lambda m: (0, 0)),   # resident weight
                pl.BlockSpec((1, Cp), lambda m: (0, 0)),     # resident scale
                pl.BlockSpec((1, Cp), lambda m: (0, 0)),     # resident shift
            ],
            out_specs=pl.BlockSpec((TM, Cp), lambda m: (m, 0)),
        ),
        compiler_params=pltpu.CompilerParams(
            dimension_semantics=("parallel",)),
    )(patches, w_mat, scale, shift)

    # (Mp, Cp) -> strip padding -> (N, Do, Ho, Wo, Cout) -> NCDHW
    out = out[:M, :Cout].reshape(N, Do, Ho, Wo, Cout)
    return jnp.transpose(out, (0, 4, 1, 2, 3))


def reference_forward(x, conv_w, conv_b, bn_gamma, bn_beta, bn_mean, bn_var, eps=1e-5):
    y = jax.lax.conv_general_dilated(
        x, conv_w, window_strides=(1, 1, 1), padding="VALID",
        dimension_numbers=("NCDHW", "OIDHW", "NCDHW"))
    y = y + conv_b.reshape(1, -1, 1, 1, 1)
    std = jnp.sqrt(bn_var + eps)
    s = (bn_gamma / std).reshape(1, -1, 1, 1, 1)
    return (y - bn_mean.reshape(1, -1, 1, 1, 1)) * s + bn_beta.reshape(1, -1, 1, 1, 1)


if __name__ == "__main__":
    key = jax.random.PRNGKey(0)
    k1, k2, k3, k4, k5, k6, k7 = jax.random.split(key, 7)

    N, Cin, Cout, D, H, W = 2, 4, 8, 8, 8, 8

    x = jax.random.normal(k1, (N, Cin, D, H, W), dtype=jnp.float32)
    conv_w = 0.1 * jax.random.normal(k2, (Cout, Cin, 3, 3, 3), dtype=jnp.float32)
    conv_b = 0.1 * jax.random.normal(k3, (Cout,), dtype=jnp.float32)
    bn_gamma = 1.0 + 0.1 * jax.random.normal(k4, (Cout,), dtype=jnp.float32)
    bn_beta = 0.1 * jax.random.normal(k5, (Cout,), dtype=jnp.float32)
    bn_mean = 0.1 * jax.random.normal(k6, (Cout,), dtype=jnp.float32)
    bn_var = jnp.abs(jax.random.normal(k7, (Cout,), dtype=jnp.float32)) + 0.5

    out = net_forward(x, conv_w, conv_b, bn_gamma, bn_beta, bn_mean, bn_var)
    out = jax.block_until_ready(out)

    ref = reference_forward(x, conv_w, conv_b, bn_gamma, bn_beta, bn_mean, bn_var)
    assert out.shape == (N, Cout, D - 2, H - 2, W - 2)
    assert jnp.allclose(out, ref, atol=1e-4, rtol=1e-4)

    print("KERNEL_OK")
</pallas_src>

<mosaic_0001>
module attributes {stable_mosaic.version = 11 : i64} {
  func.func @conv_bn_kernel(%arg0: i32, %arg1: memref<216x128xf32, #tpu.memory_space<vmem>>, %arg2: memref<128x128xf32, #tpu.memory_space<vmem>>, %arg3: memref<1x128xf32, #tpu.memory_space<vmem>>, %arg4: memref<1x128xf32, #tpu.memory_space<vmem>>, %arg5: memref<216x128xf32, #tpu.memory_space<vmem>>) attributes {dimension_semantics = [#tpu.dimension_semantics<parallel>], iteration_bounds = array<i64: 2>, scalar_prefetch = 0 : i64, scratch_operands = 0 : i64, tpu.core_type = #tpu.core_type<tc>, window_params = [{transform_indices = @transform_0, window_bounds = array<i64: 216, 128>}, {pipeline_mode = #tpu.pipeline_mode<synchronous>, transform_indices = @transform_1, window_bounds = array<i64: 128, 128>}, {pipeline_mode = #tpu.pipeline_mode<synchronous>, transform_indices = @transform_2, window_bounds = array<i64: 1, 128>}, {pipeline_mode = #tpu.pipeline_mode<synchronous>, transform_indices = @transform_3, window_bounds = array<i64: 1, 128>}, {transform_indices = @transform_4, window_bounds = array<i64: 216, 128>}]} {
    %c0 = arith.constant 0 : index
    %c0_0 = arith.constant 0 : index
    %0 = vector.load %arg1[%c0, %c0_0] : memref<216x128xf32, #tpu.memory_space<vmem>>, vector<216x128xf32>
    %c0_1 = arith.constant 0 : index
    %c0_2 = arith.constant 0 : index
    %1 = vector.load %arg2[%c0_1, %c0_2] : memref<128x128xf32, #tpu.memory_space<vmem>>, vector<128x128xf32>
    %cst = arith.constant dense<0.000000e+00> : vector<216x128xf32>
    %2 = tpu.matmul %0, %1, %cst {dimension_numbers = #tpu.dot_dimension_numbers<[1], [0], [0], [1], [0, 0, 1, 1], [], []>} : vector<216x128xf32>, vector<128x128xf32>, vector<216x128xf32> -> vector<216x128xf32>
    %c0_3 = arith.constant 0 : index
    %c0_4 = arith.constant 0 : index
    %3 = vector.load %arg3[%c0_3, %c0_4] : memref<1x128xf32, #tpu.memory_space<vmem>>, vector<1x128xf32>
    %4 = vector.broadcast %3 : vector<1x128xf32> to vector<216x128xf32>
    %5 = arith.mulf %2, %4 : vector<216x128xf32>
    %c0_5 = arith.constant 0 : index
    %c0_6 = arith.constant 0 : index
    %6 = vector.load %arg4[%c0_5, %c0_6] : memref<1x128xf32, #tpu.memory_space<vmem>>, vector<1x128xf32>
    %7 = vector.broadcast %6 : vector<1x128xf32> to vector<216x128xf32>
    %8 = arith.addf %5, %7 : vector<216x128xf32>
    %c0_7 = arith.constant 0 : index
    %c0_8 = arith.constant 0 : index
    %9 = vector.load %arg5[%c0_7, %c0_8] : memref<216x128xf32, #tpu.memory_space<vmem>>, vector<216x128xf32>
    tpu.vector_store %arg5[%c0_7, %c0_8], %8 {strides = array<i32>} : memref<216x128xf32, #tpu.memory_space<vmem>>, vector<216x128xf32>,
    return
  }
  func.func @transform_0(%arg0: i32) -> (i32, i32) {
    %c0_i32 = arith.constant 0 : i32
    %c0_i32_0 = arith.constant 0 : i32
    return %arg0, %c0_i32 : i32, i32
  }
  func.func @transform_1(%arg0: i32) -> (i32, i32) {
    %c0_i32 = arith.constant 0 : i32
    %c0_i32_0 = arith.constant 0 : i32
    %c0_i32_1 = arith.constant 0 : i32
    return %c0_i32, %c0_i32_0 : i32, i32
  }
  func.func @transform_2(%arg0: i32) -> (i32, i32) {
    %c0_i32 = arith.constant 0 : i32
    %c0_i32_0 = arith.constant 0 : i32
    %c0_i32_1 = arith.constant 0 : i32
    return %c0_i32, %c0_i32_0 : i32, i32
  }
  func.func @transform_3(%arg0: i32) -> (i32, i32) {
    %c0_i32 = arith.constant 0 : i32
    %c0_i32_0 = arith.constant 0 : i32
    %c0_i32_1 = arith.constant 0 : i32
    return %c0_i32, %c0_i32_0 : i32, i32
  }
  func.func @transform_4(%arg0: i32) -> (i32, i32) {
    %c0_i32 = arith.constant 0 : i32
    %c0_i32_0 = arith.constant 0 : i32
    return %arg0, %c0_i32 : i32, i32
  }
}

</mosaic_0001>

<bundles_post_ra>
// kernel: tpu_custom_call.1
= control target key start
LH: loop header
LB: loop body
LE: loop exit
PB: predicated region body
PF: predicated region fallthrough
CT: control target
= control target key end

     0   :  { %9 = vsyncpa [#allocation3], 0  ;;  %s1124_s0 = inlined_call_operand.hbm [shape: f32[432,128], index: 0, kind: input, shape index: {}]   ;;  %s1125_s1 = inlined_call_operand.hbm [shape: f32[128,128], index: 1, kind: input, shape index: {}]   ;;  %s1126_s2 = inlined_call_operand.vmem [shape: f32[1,128], index: 2, kind: input, shape index: {}]   ;;  %s1127_s3 = inlined_call_operand.vmem [shape: f32[1,128], index: 3, kind: input, shape index: {}]   ;;  %s1128_s4 = inlined_call_operand.hbm [shape: f32[432,128], index: 4, kind: output, shape index: {}]  }
   0x1   :  { %11 = vsyncpa [#allocation3 + $0x1], 0 }
   0x2   :  { %12 = vsyncpa [#allocation6], 0 }
   0x3   :  { %13 = vsyncpa [#allocation4], 0 }
   0x4   :  { %15 = vsyncpa [#allocation4 + $0x1], 0  ;;  %s853_s15 = smov 0   ;;  %s855_s16 = smov 0  }
   0x5   :  { %s857_s17 = smov 0   ;;  %s859_s18 = smov 0  }
   0x6 LB: > { %s874_s19 = sadd.s32 4294967295, %s821_s18   ;;  %s566_s20 = sadd.s32 4294967294, %s821_s18   ;;  %s821_s18 = sphi %s859_s18, %s1142_s18   ;;  %s817_s17 = sphi %s857_s17, %s1141_s17   ;;  %s813_s16 = sphi %s855_s16, %s1140_s16   ;;  %s809_s15 = sphi %s853_s15, %s1139_s15  }
   0x7   : > { %p41_p0 = scmp.ne.s32.totalorder %s813_s16, %s809_s15  ;;  %p42_p1 = scmp.eq.s32.totalorder %s874_s19, 0 }
   0x8   : > { %p128_p2 = scmp.eq.s32.totalorder %s874_s19, 1  ;;  %p134_p3 = scmp.eq.s32.totalorder %s566_s20, 1 }
   0x9   : > { %p883_p4 = por %p42_p1, %p41_p0  ;;  %p567_p5 = scmp.ge.s32.totalorder %s821_s18, 1 }
   0xa   : > { %p888_p6 = por %p134_p3, %p41_p0  ;;  %p141_p7 = scmp.lt.s32.totalorder %s821_s18, 3 }
   0xb   : > { %s152_s25 = sshll.u32 %s1125_s1, 4  ;;  %s823_s27 = smov [#allocation5]   ;;  %s153_s25 = int_to_ptr.hbm [resolvable:$true] %s152_s25 }
   0xc   : > { %p896_p8 = pnand %p567_p5, %p141_p7  ;;  %s154_s28 = sshll.u32 %s823_s27, 4  ;;  %s155_s28 = int_to_ptr.vmem [resolvable:$true] %s154_s28 }
   0xd   : > { %s906_s29 = sadd.s32 1, %s821_s18   ;;  %s1129_s30 = smov 128  }
   0xe   : > { %p636_p9 = pneg %p896_p8  ;;  %s1130_s5 = smov 8  }
   0xf   : > { %s25_s6 = ssub.s32 %s821_s18, %s906_s29  ;;  %s28_s7 = sadd.s32 1, %s817_s17 }
  0x10   : > { %p637_p10 = pnand %p636_p9, %p42_p1  ;;  %p26_p12 = scmp.eq.s32.totalorder %s25_s6, 0 }
  0x11   : > { %p35_p13 = scmp.ne.s32.totalorder %s817_s17, %s813_s16  ;;  %p36_p0 = scmp.eq.s32.totalorder %s821_s18, 0 }
  0x12   : > { %639 = dma.hbm_to_vmem [thread:$0]  (!%p637_p10), %s153_s25, 2048, %s155_s28, [#allocation6], %s1129_s30, %s1129_s30, %s1130_s5  }
  0x13   : > { %p649_p3 = scmp.lt.s32.totalorder %s821_s18, 2  ;;  %p37_p5 = por %p36_p0, %p35_p13 }
  0x14   : > { %s919_s8 = scalar_select %p26_p12, %s817_s17, %s28_s7  }
  0x15   : > { %p923_p7 = por %p128_p2, %p35_p13  ;;  %s174_s10 = sand.u32 1, %s817_s17  }
  0x16   : > { %s576_s11 = smul.u32 216, %s821_s18  ;;  %p932_p9 = pnand %p649_p3, %p37_p5 }
  0x17   : > { %s626_s12 = smul.u32 216, %s174_s10  ;;  %s175_s28 = scalar_lea.sflag [#allocation3], %s174_s10 }
  0x18   : > { %s183_s20 = scalar_lea.hbm %s1124_s0, %s576_s11  ;;  %p725_p10 = pneg %p932_p9 }
  0x19   : > { %s184_s24 = sshll.u32 %s183_s20, 4  ;;  %s178_s25 = scalar_lea.vmem [#allocation2], %s626_s12  ;;  %s185_s24 = int_to_ptr.hbm [resolvable:$true] %s184_s24 }
  0x1a   : > { %s186_s27 = sshll.u32 %s178_s25, 4  ;;  %s721_s6 = sshra.s32 %s185_s24, 4  ;;  %s187_s27 = int_to_ptr.vmem [resolvable:$true] %s186_s27  ;;  %s722_s6 = int_to_ptr.hbm [resolvable:$true] %s721_s6 }
  0x1b   : > { %s723_s7 = scalar_lea.hbm %s722_s6, 216  ;;  %s728_s14 = scalar_lea.hbm %s1124_s0, 432 }
  0x1c   : > { %p724_p2 = scmp.ne.s32.totalorder %s722_s6, %s723_s7  ;;  %p729_p0 = scmp.lt.s32.totalorder %s722_s6, %s1124_s0 }
  0x1d   : > { %p730_p3 = scmp.lt.s32.totalorder %s728_s14, %s723_s7 }
  0x1e   : > { %p726_p12 = pnand %p725_p10, %p724_p2 }
  0x1f   : > { %p731_p5 = por %p730_p3, %p729_p0 }
  0x20   : > { %p727_p13 = pneg %p726_p12 }
  0x22   : > { %p732_p11 = pnand %p731_p5, %p727_p13 }
  0x24   : > { %735 = shalt.err (!%p732_p11)
}
  0x25   : > { %s1136_s10 = smov 8   ;;  %s1137_s12 = smov 128  }
  0x26   : > { %643 = dma.hbm_to_vmem [thread:$0]  (!%p932_p9), %s185_s24, 3456, %s187_s27, %s175_s28, %s1137_s12, %s1137_s12, %s1136_s10  }
  0x27   : > { %198 = sbr.rel (%p896_p8) target bundleno = 268 (0x10c), region = 36  ;;  %s952_s20 = sand.u32 (!%p896_p8), 1, %s813_s16  }
  0x28   : > { %s627_s30 = smul.u32 (!%p896_p8), 216, %s952_s20  ;;  %s201_s5 = scalar_lea.sflag (!%p896_p8), [#allocation3], %s952_s20 }
  0x2a   : > { %s958_s25 = scalar_lea.vmem (!%p896_p8), [#allocation2], %s627_s30 }
  0x2c   : > { %796 = dma.done.wait (%p883_p4), %s201_s5, 3456  }
  0x2d   : > { %798 = vsyncadd (%p883_p4), %s201_s5, 4294963840 }
  0x2e   : > { %800 = dma.done.wait (%p42_p1), [#allocation6], 2048  }
  0x2f   : > { %802 = vsyncadd (%p42_p1), [#allocation6], 4294965248  ;;  %v279_v0 = vld [vmem:[#allocation5 + $0x78] sm:$0xff]  ;;  %v278_v1 = vld [vmem:[#allocation5 + $0x70] sm:$0xff]  ;;  %s1011_s27 = scalar_lea.vmem [#allocation7], %s627_s30  ;;  %s577_s28 = smul.u32 216, %s874_s19 }
  0x30   : > { %579 = vmatpush.msra.mxu2 %v279_v0  ;;  %580 = vmatpush.msra.mxu3 %v279_v0  ;;  %v277_v2 = vld [vmem:[#allocation5 + $0x68] sm:$0xff]  ;;  %v276_v3 = vld [vmem:[#allocation5 + $0x60] sm:$0xff]  ;;  %v275_v4 = vld [vmem:[#allocation5 + $0x58] sm:$0xff]  ;;  %s480_s19 = sshll.u32 %s1011_s27, 4  ;;  %s468_s14 = scalar_lea.sflag [#allocation4], %s952_s20  ;;  %s481_s19 = int_to_ptr.vmem [resolvable:$true] %s480_s19 }
  0x31   : > { %280 = vmatpush.msra.mxu0 %v279_v0  ;;  %578 = vmatpush.msra.mxu1 %v279_v0  ;;  %v274_v5 = vld [vmem:[#allocation5 + $0x50] sm:$0xff]  ;;  %v273_v6 = vld [vmem:[#allocation5 + $0x48] sm:$0xff]  ;;  %v272_v7 = vld [vmem:[#allocation5 + $0x40] sm:$0xff]  ;;  %s479_s11 = scalar_lea.hbm %s1128_s4, %s577_s28 }
  0x32   : > { %582 = vmatpush.msra.mxu2 %v278_v1  ;;  %583 = vmatpush.msra.mxu3 %v278_v1  ;;  %v271_v8 = vld [vmem:[#allocation5 + $0x38] sm:$0xff]  ;;  %v270_v9 = vld [vmem:[#allocation5 + $0x30] sm:$0xff]  ;;  %v269_v10 = vld [vmem:[#allocation5 + $0x28] sm:$0xff]  ;;  %s482_s13 = sshll.u32 %s479_s11, 4  ;;  %s483_s13 = int_to_ptr.hbm [resolvable:$true] %s482_s13 }
  0x33   : > { %281 = vmatpush.msra.mxu0 %v278_v1  ;;  %581 = vmatpush.msra.mxu1 %v278_v1  ;;  %v268_v11 = vld [vmem:[#allocation5 + $0x20] sm:$0xff]  ;;  %v267_v12 = vld [vmem:[#allocation5 + $0x18] sm:$0xff]  ;;  %v266_v13 = vld [vmem:[#allocation5 + $0x10] sm:$0xff]  ;;  %s765_s10 = sshra.s32 %s483_s13, 4  ;;  %s766_s10 = int_to_ptr.hbm [resolvable:$true] %s765_s10 }
  0x34   : > { %585 = vmatpush.msra.mxu2 %v277_v2  ;;  %586 = vmatpush.msra.mxu3 %v277_v2  ;;  %v265_v14 = vld [vmem:[#allocation5 + $0x8] sm:$0xff]  ;;  %v264_v15 = vld [vmem:[#allocation5] sm:$0xff]  ;;  %v250_v16 = vld [vmem:[%s958_s25 + $0x68] sm:$0xff]  ;;  %s767_s12 = scalar_lea.hbm %s766_s10, 216  ;;  %p772_p11 = scmp.lt.s32.totalorder %s766_s10, %s1128_s4 }
  0x35   : > { %282 = vmatpush.msra.mxu0 %v277_v2  ;;  %584 = vmatpush.msra.mxu1 %v277_v2  ;;  %v257_v17 = vld [vmem:[%s958_s25 + $0xa0] sm:$0xff]  ;;  %v244_v19 = vld [vmem:[%s958_s25 + $0x38] sm:$0xff]  ;;  %v251_v20 = vld [vmem:[%s958_s25 + $0x70] sm:$0xff]  ;;  %p768_p1 = scmp.ne.s32.totalorder %s766_s10, %s767_s12 }
  0x36   : > { %588 = vmatpush.msra.mxu2 %v276_v3  ;;  %589 = vmatpush.msra.mxu3 %v276_v3  ;;  %v237_v18 = vld [vmem:[%s958_s25] sm:$0xff]  ;;  %v258_v21 = vld [vmem:[%s958_s25 + $0xa8] sm:$0xff]  ;;  %v252_v24 = vld [vmem:[%s958_s25 + $0x78] sm:$0xff] }
  0x37   : > { %283 = vmatpush.msra.mxu0 %v276_v3  ;;  %587 = vmatpush.msra.mxu1 %v276_v3  ;;  %v238_v22 = vld [vmem:[%s958_s25 + $0x8] sm:$0xff]  ;;  %v245_v23 = vld [vmem:[%s958_s25 + $0x40] sm:$0xff]  ;;  %v259_v25 = vld [vmem:[%s958_s25 + $0xb0] sm:$0xff]  ;;  %p769_p4 = pnand %p768_p1, %p923_p7 }
  0x38   : > { %591 = vmatpush.msra.mxu2 %v275_v4  ;;  %592 = vmatpush.msra.mxu3 %v275_v4  ;;  %v239_v26 = vld [vmem:[%s958_s25 + $0x10] sm:$0xff]  ;;  %v246_v27 = vld [vmem:[%s958_s25 + $0x48] sm:$0xff]  ;;  %v253_v28 = vld [vmem:[%s958_s25 + $0x80] sm:$0xff] }
  0x39   : > { %284 = vmatpush.msra.mxu0 %v275_v4  ;;  %590 = vmatpush.msra.mxu1 %v275_v4  ;;  %v260_v29 = vld [vmem:[%s958_s25 + $0xb8] sm:$0xff]  ;;  %v247_v31 = vld [vmem:[%s958_s25 + $0x50] sm:$0xff]  ;;  %v254_v32 = vld [vmem:[%s958_s25 + $0x88] sm:$0xff]  ;;  %p770_p8 = pneg %p769_p4 }
  0x3a   : > { %594 = vmatpush.msra.mxu2 %v274_v5  ;;  %595 = vmatpush.msra.mxu3 %v274_v5  ;;  %v240_v30 = vld [vmem:[%s958_s25 + $0x18] sm:$0xff]  ;;  %v261_v33 = vld [vmem:[%s958_s25 + $0xc0] sm:$0xff]  ;;  %v255_v36 = vld [vmem:[%s958_s25 + $0x90] sm:$0xff] }
  0x3b   : > { %285 = vmatpush.msra.mxu0 %v274_v5  ;;  %593 = vmatpush.msra.mxu1 %v274_v5  ;;  %v241_v34 = vld [vmem:[%s958_s25 + $0x20] sm:$0xff]  ;;  %v248_v35 = vld [vmem:[%s958_s25 + $0x58] sm:$0xff]  ;;  %v262_v37 = vld [vmem:[%s958_s25 + $0xc8] sm:$0xff] }
  0x3c   : > { %597 = vmatpush.msra.mxu2 %v273_v6  ;;  %598 = vmatpush.msra.mxu3 %v273_v6  ;;  %v242_v38 = vld [vmem:[%s958_s25 + $0x28] sm:$0xff]  ;;  %v249_v39 = vld [vmem:[%s958_s25 + $0x60] sm:$0xff]  ;;  %v256_v40 = vld [vmem:[%s958_s25 + $0x98] sm:$0xff] }
  0x3d   : > { %286 = vmatpush.msra.mxu0 %v273_v6  ;;  %596 = vmatpush.msra.mxu1 %v273_v6  ;;  %v263_v41 = vld [vmem:[%s958_s25 + $0xd0] sm:$0xff]  ;;  %v998_v43 = vld [vmem:[%s1126_s2] ss:$0 sm:$0xff] }
  0x3e   : > { %600 = vmatpush.msra.mxu2 %v272_v7  ;;  %601 = vmatpush.msra.mxu3 %v272_v7  ;;  %v243_v42 = vld [vmem:[%s958_s25 + $0x30] sm:$0xff]  ;;  %v1003_v44 = vld [vmem:[%s1127_s3] ss:$0 sm:$0xff]  ;;  %s771_s25 = scalar_lea.hbm %s1128_s4, 432 }
  0x3f   : > { %287 = vmatpush.msra.mxu0 %v272_v7  ;;  %599 = vmatpush.msra.mxu1 %v272_v7  ;;  %p773_p9 = scmp.lt.s32.totalorder %s771_s25, %s767_s12 }
  0x40   : > { %603 = vmatpush.msra.mxu2 %v271_v8  ;;  %604 = vmatpush.msra.mxu3 %v271_v8 }
  0x41   : > { %288 = vmatpush.msra.mxu0 %v271_v8  ;;  %602 = vmatpush.msra.mxu1 %v271_v8  ;;  %p774_p2 = por %p773_p9, %p772_p11 }
  0x42   : > { %606 = vmatpush.msra.mxu2 %v270_v9  ;;  %607 = vmatpush.msra.mxu3 %v270_v9 }
  0x43   : > { %289 = vmatpush.msra.mxu0 %v270_v9  ;;  %605 = vmatpush.msra.mxu1 %v270_v9  ;;  %p775_p10 = pnand %p774_p2, %p770_p8 }
  0x44   : > { %609 = vmatpush.msra.mxu2 %v269_v10  ;;  %610 = vmatpush.msra.mxu3 %v269_v10 }
  0x45   : > { %290 = vmatpush.msra.mxu0 %v269_v10  ;;  %608 = vmatpush.msra.mxu1 %v269_v10 }
  0x46   : > { %612 = vmatpush.msra.mxu2 %v268_v11  ;;  %613 = vmatpush.msra.mxu3 %v268_v11 }
  0x47   : > { %291 = vmatpush.msra.mxu0 %v268_v11  ;;  %611 = vmatpush.msra.mxu1 %v268_v11 }
  0x48   : > { %615 = vmatpush.msra.mxu2 %v267_v12  ;;  %616 = vmatpush.msra.mxu3 %v267_v12 }
  0x49   : > { %292 = vmatpush.msra.mxu0 %v267_v12  ;;  %614 = vmatpush.msra.mxu1 %v267_v12 }
  0x4a   : > { %618 = vmatpush.msra.mxu2 %v266_v13  ;;  %619 = vmatpush.msra.mxu3 %v266_v13 }
  0x4b   : > { %293 = vmatpush.msra.mxu0 %v266_v13  ;;  %617 = vmatpush.msra.mxu1 %v266_v13 }
  0x4c   : > { %621 = vmatpush.msra.mxu2 %v265_v14  ;;  %622 = vmatpush.msra.mxu3 %v265_v14 }
  0x4d   : > { %294 = vmatpush.msra.mxu0 %v265_v14  ;;  %620 = vmatpush.msra.mxu1 %v265_v14 }
  0x4e   : > { %624 = vmatpush.msra.mxu2 %v264_v15  ;;  %625 = vmatpush.msra.mxu3 %v264_v15 }
  0x4f   : > { %335 = vmatmul.f32.vlgmr.msra.gmra.mxu2 %v250_v16  ;;  %356 = vmatmul.f32.vlgmr.msra.gmra.mxu3 %v257_v17 }
  0x50   : > { %295 = vmatpush.msra.mxu0 %v264_v15  ;;  %623 = vmatpush.msra.mxu1 %v264_v15 }
  0x51   : > { %296 = vmatmul.f32.vlgmr.msra.gmra.mxu0 %v237_v18  ;;  %317 = vmatmul.f32.vlgmr.msra.gmra.mxu1 %v244_v19 }
  0x57   : > { %338 = vmatmul.f32.gmra.mxu2 %v251_v20  ;;  %359 = vmatmul.f32.gmra.mxu3 %v258_v21 }
  0x59   : > { %299 = vmatmul.f32.gmra.mxu0 %v238_v22  ;;  %320 = vmatmul.f32.gmra.mxu1 %v245_v23 }
  0x5f   : > { %341 = vmatmul.f32.gmra.mxu2 %v252_v24  ;;  %362 = vmatmul.f32.gmra.mxu3 %v259_v25 }
  0x61   : > { %302 = vmatmul.f32.gmra.mxu0 %v239_v26  ;;  %323 = vmatmul.f32.gmra.mxu1 %v246_v27 }
  0x67   : > { %344 = vmatmul.f32.gmra.mxu2 %v253_v28  ;;  %365 = vmatmul.f32.gmra.mxu3 %v260_v29 }
  0x69   : > { %305 = vmatmul.f32.gmra.mxu0 %v240_v30  ;;  %326 = vmatmul.f32.gmra.mxu1 %v247_v31 }
  0x6f   : > { %347 = vmatmul.f32.gmra.mxu2 %v254_v32  ;;  %368 = vmatmul.f32.gmra.mxu3 %v261_v33 }
  0x71   : > { %308 = vmatmul.f32.gmra.mxu0 %v241_v34  ;;  %329 = vmatmul.f32.gmra.mxu1 %v248_v35 }
  0x77   : > { %350 = vmatmul.f32.gmra.mxu2 %v255_v36  ;;  %371 = vmatmul.f32.gmra.mxu3 %v262_v37 }
  0x79   : > { %311 = vmatmul.f32.gmra.mxu0 %v242_v38  ;;  %332 = vmatmul.f32.gmra.mxu1 %v249_v39 }
  0x7f   : > { %353 = vmatmul.f32.gmra.mxu2 %v256_v40  ;;  %374 = vmatmul.f32.gmra.mxu3 %v263_v41 }
  0x81   : > { %314 = vmatmul.f32.gmra.mxu0 %v243_v42 }
  0xce   : > { %v297_v45 = vpop.f32.mrf.mxu0  ;;  %v318_v46 = vpop.f32.mrf.mxu1 }
  0xcf   : > { %v382_v47 = vmul.f32 %v998_v43, %v297_v45  ;;  %v389_v48 = vmul.f32 %v998_v43, %v318_v46 }
  0xd1   : > { %v413_v49 = vadd.f32 %v1003_v44, %v382_v47  ;;  %v420_v50 = vadd.f32 %v1003_v44, %v389_v48 }
  0xd2   : > { %v336_v51 = vpop.f32.mrf.mxu2  ;;  %v357_v52 = vpop.f32.mrf.mxu3 }
  0xd3   : > { %440 = vst [vmem:[%s1011_s27] sm:$0xff] %v413_v49  ;;  %v395_v53 = vmul.f32 %v998_v43, %v336_v51  ;;  %v402_v54 = vmul.f32 %v998_v43, %v357_v52 }
  0xd4   : > { %447 = vst [vmem:[%s1011_s27 + $0x38] sm:$0xff] %v420_v50 }
  0xd5   : > { %v426_v55 = vadd.f32 %v1003_v44, %v395_v53  ;;  %v433_v56 = vadd.f32 %v1003_v44, %v402_v54 }
  0xd6   : > { %v300_v57 = vpop.f32.mrf.mxu0  ;;  %v321_v58 = vpop.f32.mrf.mxu1 }
  0xd7   : > { %453 = vst [vmem:[%s1011_s27 + $0x68] sm:$0xff] %v426_v55  ;;  %v383_v59 = vmul.f32 %v998_v43, %v300_v57  ;;  %v390_v60 = vmul.f32 %v998_v43, %v321_v58 }
  0xd8   : > { %460 = vst [vmem:[%s1011_s27 + $0xa0] sm:$0xff] %v433_v56 }
  0xd9   : > { %v414_v61 = vadd.f32 %v1003_v44, %v383_v59  ;;  %v421_v62 = vadd.f32 %v1003_v44, %v390_v60 }
  0xda   : > { %v339_v63 = vpop.f32.mrf.mxu2  ;;  %v360_v0 = vpop.f32.mrf.mxu3 }
  0xdb   : > { %441 = vst [vmem:[%s1011_s27 + $0x8] sm:$0xff] %v414_v61  ;;  %v396_v1 = vmul.f32 %v998_v43, %v339_v63  ;;  %v403_v2 = vmul.f32 %v998_v43, %v360_v0 }
  0xdc   : > { %448 = vst [vmem:[%s1011_s27 + $0x40] sm:$0xff] %v421_v62 }
  0xdd   : > { %v427_v3 = vadd.f32 %v1003_v44, %v396_v1  ;;  %v434_v4 = vadd.f32 %v1003_v44, %v403_v2 }
  0xde   : > { %v303_v5 = vpop.f32.mrf.mxu0  ;;  %v324_v6 = vpop.f32.mrf.mxu1 }
  0xdf   : > { %454 = vst [vmem:[%s1011_s27 + $0x70] sm:$0xff] %v427_v3  ;;  %v384_v7 = vmul.f32 %v998_v43, %v303_v5  ;;  %v391_v8 = vmul.f32 %v998_v43, %v324_v6 }
  0xe0   : > { %461 = vst [vmem:[%s1011_s27 + $0xa8] sm:$0xff] %v434_v4 }
  0xe1   : > { %v415_v9 = vadd.f32 %v1003_v44, %v384_v7  ;;  %v422_v10 = vadd.f32 %v1003_v44, %v391_v8 }
  0xe2   : > { %v342_v11 = vpop.f32.mrf.mxu2  ;;  %v363_v12 = vpop.f32.mrf.mxu3 }
  0xe3   : > { %442 = vst [vmem:[%s1011_s27 + $0x10] sm:$0xff] %v415_v9  ;;  %v397_v13 = vmul.f32 %v998_v43, %v342_v11  ;;  %v404_v14 = vmul.f32 %v998_v43, %v363_v12 }
  0xe4   : > { %449 = vst [vmem:[%s1011_s27 + $0x48] sm:$0xff] %v422_v10 }
  0xe5   : > { %v428_v15 = vadd.f32 %v1003_v44, %v397_v13  ;;  %v435_v16 = vadd.f32 %v1003_v44, %v404_v14 }
  0xe6   : > { %v306_v17 = vpop.f32.mrf.mxu0  ;;  %v327_v18 = vpop.f32.mrf.mxu1 }
  0xe7   : > { %455 = vst [vmem:[%s1011_s27 + $0x78] sm:$0xff] %v428_v15  ;;  %v385_v19 = vmul.f32 %v998_v43, %v306_v17  ;;  %v392_v20 = vmul.f32 %v998_v43, %v327_v18 }
  0xe8   : > { %462 = vst [vmem:[%s1011_s27 + $0xb0] sm:$0xff] %v435_v16 }
  0xe9   : > { %v416_v21 = vadd.f32 %v1003_v44, %v385_v19  ;;  %v423_v22 = vadd.f32 %v1003_v44, %v392_v20 }
  0xea   : > { %v345_v23 = vpop.f32.mrf.mxu2  ;;  %v366_v24 = vpop.f32.mrf.mxu3 }
  0xeb   : > { %443 = vst [vmem:[%s1011_s27 + $0x18] sm:$0xff] %v416_v21  ;;  %v398_v25 = vmul.f32 %v998_v43, %v345_v23  ;;  %v405_v26 = vmul.f32 %v998_v43, %v366_v24 }
  0xec   : > { %450 = vst [vmem:[%s1011_s27 + $0x50] sm:$0xff] %v423_v22 }
  0xed   : > { %v429_v27 = vadd.f32 %v1003_v44, %v398_v25  ;;  %v436_v28 = vadd.f32 %v1003_v44, %v405_v26 }
  0xee   : > { %v309_v29 = vpop.f32.mrf.mxu0  ;;  %v330_v30 = vpop.f32.mrf.mxu1 }
  0xef   : > { %456 = vst [vmem:[%s1011_s27 + $0x80] sm:$0xff] %v429_v27  ;;  %v386_v31 = vmul.f32 %v998_v43, %v309_v29  ;;  %v393_v32 = vmul.f32 %v998_v43, %v330_v30 }
  0xf0   : > { %463 = vst [vmem:[%s1011_s27 + $0xb8] sm:$0xff] %v436_v28 }
  0xf1   : > { %v417_v33 = vadd.f32 %v1003_v44, %v386_v31  ;;  %v424_v34 = vadd.f32 %v1003_v44, %v393_v32 }
  0xf2   : > { %v348_v35 = vpop.f32.mrf.mxu2  ;;  %v369_v36 = vpop.f32.mrf.mxu3 }
  0xf3   : > { %444 = vst [vmem:[%s1011_s27 + $0x20] sm:$0xff] %v417_v33  ;;  %v399_v37 = vmul.f32 %v998_v43, %v348_v35  ;;  %v406_v38 = vmul.f32 %v998_v43, %v369_v36 }
  0xf4   : > { %451 = vst [vmem:[%s1011_s27 + $0x58] sm:$0xff] %v424_v34 }
  0xf5   : > { %v430_v39 = vadd.f32 %v1003_v44, %v399_v37  ;;  %v437_v40 = vadd.f32 %v1003_v44, %v406_v38 }
  0xf6   : > { %v312_v41 = vpop.f32.mrf.mxu0  ;;  %v333_v42 = vpop.f32.mrf.mxu1 }
  0xf7   : > { %457 = vst [vmem:[%s1011_s27 + $0x88] sm:$0xff] %v430_v39  ;;  %v387_v45 = vmul.f32 %v998_v43, %v312_v41  ;;  %v394_v46 = vmul.f32 %v998_v43, %v333_v42 }
  0xf8   : > { %464 = vst [vmem:[%s1011_s27 + $0xc0] sm:$0xff] %v437_v40 }
  0xf9   : > { %v418_v47 = vadd.f32 %v1003_v44, %v387_v45  ;;  %v425_v48 = vadd.f32 %v1003_v44, %v394_v46 }
  0xfa   : > { %v351_v49 = vpop.f32.mrf.mxu2  ;;  %v372_v50 = vpop.f32.mrf.mxu3 }
  0xfb   : > { %445 = vst [vmem:[%s1011_s27 + $0x28] sm:$0xff] %v418_v47  ;;  %v400_v51 = vmul.f32 %v998_v43, %v351_v49  ;;  %v407_v52 = vmul.f32 %v998_v43, %v372_v50 }
  0xfc   : > { %452 = vst [vmem:[%s1011_s27 + $0x60] sm:$0xff] %v425_v48 }
  0xfd   : > { %v431_v53 = vadd.f32 %v1003_v44, %v400_v51  ;;  %v438_v54 = vadd.f32 %v1003_v44, %v407_v52 }
  0xfe   : > { %v315_v55 = vpop.f32.mrf.mxu0 }
  0xff   : > { %458 = vst [vmem:[%s1011_s27 + $0x90] sm:$0xff] %v431_v53  ;;  %v388_v56 = vmul.f32 %v998_v43, %v315_v55 }
 0x100   : > { %465 = vst [vmem:[%s1011_s27 + $0xc8] sm:$0xff] %v438_v54 }
 0x101   : > { %v419_v57 = vadd.f32 %v1003_v44, %v388_v56 }
 0x102   : > { %v354_v58 = vpop.f32.mrf.mxu2  ;;  %v375_v59 = vpop.f32.mrf.mxu3 }
 0x103   : > { %446 = vst [vmem:[%s1011_s27 + $0x30] sm:$0xff] %v419_v57  ;;  %v401_v60 = vmul.f32 %v998_v43, %v354_v58  ;;  %v408_v61 = vmul.f32 %v998_v43, %v375_v59 }
 0x105   : > { %v432_v62 = vadd.f32 %v1003_v44, %v401_v60  ;;  %v439_v63 = vadd.f32 %v1003_v44, %v408_v61 }
 0x107   : > { %459 = vst [vmem:[%s1011_s27 + $0x98] sm:$0xff] %v432_v62 }
 0x108   : > { %466 = vst [vmem:[%s1011_s27 + $0xd0] sm:$0xff] %v439_v63 }
 0x109   : > { %778 = shalt.err (!%p775_p10)
}
 0x10a   : > { %s826_s20 = smov 128   ;;  %s827_s23 = smov 8  }
 0x10b   : > { %634 = dma.vmem_to_hbm [thread:$0]  (%p923_p7), %s481_s19, 3456, %s483_s13, %s468_s14, %s826_s20, %s826_s20, %s827_s23  }
 0x10c PF: > { %s497_s24 = sand.u32 1, %s809_s15   ;;  %p1138_p12 = scmp.ge.s32.totalorder %s821_s18, 2 }
 0x10d   : > { %s498_s27 = scalar_lea.sflag [#allocation4], %s497_s24 }
 0x10e   : > { %p645_p13 = pnand %p1138_p12, %p888_p6 }
 0x110   : > { %p646_p0 = pneg %p645_p13 }
 0x112   : > { %804 = dma.done.wait (%p646_p0), %s498_s27, 3456  }
 0x113   : > { %806 = vsyncadd (%p646_p0), %s498_s27, 4294963840  ;;  %p18_p3 = scmp.ge.s32.totalorder %s906_s29, 4   ;;  %s1139_s15 = smov %s813_s16 }
 0x114   : > { %s1140_s16 = smov %s817_s17  ;;  %s1141_s17 = smov %s919_s8 }
 0x115   : > { %s1142_s18 = smov %s906_s29  ;;  %20 = sbr.rel (!%p18_p3) target bundleno = 6 (0x6), region = 85 }
 0x11a   :  { %504 = vsyncpa [#allocation3], 1 }
 0x11b   :  { %506 = vsyncpa [#allocation3 + $0x1], 1 }
 0x11c   :  { %507 = vsyncpa [#allocation6], 1 }
 0x11d   :  { %508 = vsyncpa [#allocation4], 1 }
 0x11e   :  { %510 = vsyncpa [#allocation4 + $0x1], 1 }

</bundles_post_ra>
